<compile_context>
chip_gen: v7x
topology: tpu7x:2x2x1
jax: 0.10.0
libtpu: 0.0.40
codegen_flags: <defaults>
</compile_context>

<pallas_src>
import functools

import jax
import jax.numpy as jnp
from jax import lax
from jax.experimental import pallas as pl
from jax.experimental.pallas import tpu as pltpu

_LANES = 128
_SUBLANES = 8
_MAX_BLOCK_ROWS = 8192      # 8192 * 128 * 4B = 4 MiB per f32 input block
_CHUNK_ROWS = 128           # in-kernel chunk: 16 f32 vregs per stream
_CHARB_EPS2 = 1e-3 ** 2


def _metric_elem(p, g, metric):
    d = p.astype(jnp.float32) - g.astype(jnp.float32)
    if metric == 'l1':
        return jnp.abs(d)
    if metric == 'l2':
        return d * d
    if metric == 'charbonnier':
        return jnp.sqrt(d * d + jnp.float32(_CHARB_EPS2))
    raise ValueError(f"unsupported metric {metric!r}")


def _detect_core_split():
    # v5e / v6e have a single TensorCore; only v7x-class chips benefit from a
    # 2-way "parallel" leading grid axis.
    # TODO(synk): verify on v7x that "parallel" really shards across the two
    # TensorCores (else switch to pltpu.CORE_PARALLEL / an explicit core_map).
    try:
        kind = jax.devices()[0].device_kind.lower()
    except Exception:
        return 1
    return 2 if ("v7" in kind or "7x" in kind) else 1


def _pixel_err_kernel(*refs, metric, rows, block_rows, chunk_rows, inner,
                      blocks_total, has_mask, needs_edge_mask):
    """Streams (block_rows,128) tiles and accumulates error (+mask count)."""
    if has_mask:
        p_ref, g_ref, m_ref, err_ref, cnt_ref = refs
    else:
        p_ref, g_ref, err_ref = refs
        m_ref = cnt_ref = None

    c = pl.program_id(0)        # core-split ("parallel") axis
    i = pl.program_id(1)        # reduction ("arbitrary") axis
    fb = c * inner + i          # flat block index

    @pl.when(i == 0)
    def _():
        err_ref[...] = jnp.zeros_like(err_ref)
        if has_mask:
            cnt_ref[...] = jnp.zeros_like(cnt_ref)

    n_chunks = block_rows // chunk_rows
    n_fold = chunk_rows // _SUBLANES
    zero = jnp.zeros((_SUBLANES, _LANES), jnp.float32)

    def fold(x):
        # (chunk_rows,128) -> (8,128): VPU adds only, (8,128) tiles preserved.
        return x.reshape(n_fold, _SUBLANES, _LANES).sum(axis=0)

    def accumulate(row_bound):
        """row_bound: None (no edge masking) or scalar #valid rows in block."""
        if row_bound is not None:
            # Loop-invariant: hoisted out of the chunk loop.
            row_ids = lax.broadcasted_iota(jnp.int32, (chunk_rows, _LANES), 0)

        def body(idx, carry):
            r0 = idx * chunk_rows
            if not isinstance(r0, int):
                r0 = pl.multiple_of(r0, chunk_rows)
            p = p_ref[pl.ds(r0, chunk_rows), :]
            g = g_ref[pl.ds(r0, chunk_rows), :]
            e = _metric_elem(p, g, metric)
            cnt = None
            if has_mask:
                mf = m_ref[pl.ds(r0, chunk_rows), :].astype(jnp.float32)
                e = e * mf
                cnt = mf
            if row_bound is not None:
                # Must stay a select (not a multiply): rows past the array end
                # hold stale VMEM data that may be NaN/Inf.
                inb = row_ids < (row_bound - r0)
                e = jnp.where(inb, e, 0.0)
                if has_mask:
                    cnt = jnp.where(inb, cnt, 0.0)
            if has_mask:
                acc_e, acc_c = carry
                return acc_e + fold(e), acc_c + fold(cnt)
            return carry + fold(e)

        init = (zero, zero) if has_mask else zero
        if n_chunks <= 8:
            acc = init
            for idx in range(n_chunks):       # fully unrolled at trace time
                acc = body(idx, acc)
        else:
            acc = lax.fori_loop(0, n_chunks, body, init)
        if has_mask:
            err_ref[...] += acc[0]
            cnt_ref[...] += acc[1]
        else:
            err_ref[...] += acc

    if not needs_edge_mask:
        # Fully aligned grid: no bounds arithmetic compiled in at all.
        accumulate(None)
    else:
        # Only the block straddling `rows` (and clamped duplicate blocks from
        # the core split) needs masking; everything else takes the cheap path.
        first_masked = blocks_total - 1 if (rows % block_rows) else blocks_total
        edge = fb >= first_masked

        @pl.when(jnp.logical_not(edge))
        def _():
            accumulate(None)

        @pl.when(edge)
        def _():
            accumulate(rows - fb * block_rows)   # <= 0 for clamped duplicates


def _partial_sums(p2, g2, m2, *, metric):
    """Pallas reduction over (rows,128) streams; returns (8,128) partials."""
    rows = p2.shape[0]
    has_mask = m2 is not None
    streams = [p2, g2] + ([m2] if has_mask else [])
    itemsizes = [s.dtype.itemsize for s in streams]

    # Sub-32-bit dtypes pack 2/4 rows per sublane -> round block rows so every
    # stream gets whole packed sublanes.
    row_align = max(_SUBLANES, *(32 // s for s in itemsizes))
    block_rows = _MAX_BLOCK_ROWS if rows >= _MAX_BLOCK_ROWS else rows
    block_rows = -(-block_rows // row_align) * row_align
    chunk_rows = min(_CHUNK_ROWS, block_rows)
    block_rows = -(-block_rows // chunk_rows) * chunk_rows

    blocks_total = -(-rows // block_rows)
    n_split = min(_detect_core_split(), blocks_total)
    inner = -(-blocks_total // n_split)
    needs_edge_mask = (rows % block_rows != 0) or (n_split * inner > blocks_total)

    def in_map(c, i):
        # Clamp duplicate blocks from the core split; their contribution is
        # zeroed in-kernel via the row bound.
        return (jnp.minimum(c * inner + i, blocks_total - 1), 0)

    in_spec = pl.BlockSpec((block_rows, _LANES), in_map)
    out_spec = pl.BlockSpec((None, _SUBLANES, _LANES), lambda c, i: (c, 0, 0))
    out_struct = jax.ShapeDtypeStruct((n_split, _SUBLANES, _LANES), jnp.float32)

    kernel = functools.partial(
        _pixel_err_kernel, metric=metric, rows=rows, block_rows=block_rows,
        chunk_rows=chunk_rows, inner=inner, blocks_total=blocks_total,
        has_mask=has_mask, needs_edge_mask=needs_edge_mask)

    if has_mask:
        in_specs = [in_spec, in_spec, in_spec]
        out_specs = (out_spec, out_spec)
        out_shape = (out_struct, out_struct)
        args = (p2, g2, m2)
    else:
        in_specs = [in_spec, in_spec]
        out_specs = out_spec
        out_shape = out_struct
        args = (p2, g2)

    # Double-buffered input blocks + headroom; v5e's default scoped VMEM limit
    # (16 MiB) is too small for 4 MiB-per-stream blocks.
    block_bytes = block_rows * _LANES * sum(itemsizes)
    vmem_limit = int(min(3 * block_bytes + (4 << 20), 64 << 20))

    n_elems = rows * _LANES
    cost = pl.CostEstimate(
        flops=3 * n_elems,
        transcendentals=n_elems if metric == 'charbonnier' else 0,
        bytes_accessed=sum(s.nbytes for s in streams)
        + n_split * _SUBLANES * _LANES * 4 * (2 if has_mask else 1))

    return pl.pallas_call(
        kernel,
        out_shape=out_shape,
        grid_spec=pltpu.PrefetchScalarGridSpec(
            num_scalar_prefetch=0,
            grid=(n_split, inner),
            in_specs=in_specs,
            out_specs=out_specs),
        compiler_params=pltpu.CompilerParams(
            dimension_semantics=(
                "parallel" if n_split > 1 else "arbitrary", "arbitrary"),
            vmem_limit_bytes=vmem_limit),
        cost_estimate=cost,
    )(*args)


def pixel_wise_error(pred, gt, valid=None, *, metric='l1', boundary_ignore=None):
    """JAX/Pallas equivalent of PixelWiseError.forward for NCHW inputs."""
    if metric not in ('l1', 'l2', 'charbonnier'):
        # TODO(synk): 'l2_sqrt' (channel reduction before the sqrt) is a
        # different reduction shape; not implemented.
        raise ValueError(f"unsupported metric {metric!r}")

    if boundary_ignore is not None and boundary_ignore > 0:
        b = boundary_ignore
        pred = pred[..., b:-b, b:-b]
        gt = gt[..., b:-b, b:-b]
        if valid is not None:
            valid = valid[..., b:-b, b:-b]

    n = pred.size
    pred_flat = pred.reshape(-1)
    gt_flat = gt.reshape(-1)

    v_flat = None
    if valid is not None:
        v = valid
        if jnp.issubdtype(v.dtype, jnp.bool_):
            # 1-byte mask stream (explicit int8 cast kept for lowering safety).
            v = v.astype(jnp.int8)
        if v.shape != pred.shape:
            # TODO(synk): a broadcast (e.g. single-channel) mask materializes
            # one byte/elem here; indexing the small mask via the BlockSpec
            # would avoid it but needs H*W-aligned blocks.
            v = jnp.broadcast_to(v, pred.shape)
        v_flat = v.reshape(-1)

    rows = n // _LANES
    n_aligned = rows * _LANES
    has_tail = n_aligned != n

    main_err = jnp.float32(0.0)
    main_cnt = jnp.float32(0.0)
    tail_err = jnp.float32(0.0)
    tail_cnt = jnp.float32(0.0)

    if rows > 0:
        def main_rows(x):
            # No jnp.pad: lane-aligned inputs get a free reshape; only ragged
            # inputs pay for a prefix slice (the <128-elem tail is handled in
            # plain jnp below).
            if has_tail:
                x = x[:n_aligned]
            return x.reshape(rows, _LANES)

        p2 = main_rows(pred_flat)
        g2 = main_rows(gt_flat)
        m2 = main_rows(v_flat) if v_flat is not None else None
        out = _partial_sums(p2, g2, m2, metric=metric)
        if valid is None:
            main_err = jnp.sum(out)
        else:
            main_err = jnp.sum(out[0])
            main_cnt = jnp.sum(out[1])

    if has_tail:
        e_t = _metric_elem(pred_flat[n_aligned:], gt_flat[n_aligned:], metric)
        if v_flat is not None:
            mf = v_flat[n_aligned:].astype(jnp.float32)
            tail_err = jnp.sum(e_t * mf)
            tail_cnt = jnp.sum(mf)
        else:
            tail_err = jnp.sum(e_t)

    if valid is None:
        return (main_err + tail_err) / jnp.float32(n)
    return (main_err + tail_err) / (main_cnt + tail_cnt + jnp.float32(1e-12))


def _reference(pred, gt, valid=None, *, metric='l1', boundary_ignore=None):
    """Pure-JAX reference mirroring the PyTorch module semantics."""
    if boundary_ignore is not None and boundary_ignore > 0:
        b = boundary_ignore
        pred = pred[..., b:-b, b:-b]
        gt = gt[..., b:-b, b:-b]
        if valid is not None:
            valid = valid[..., b:-b, b:-b]
    e = _metric_elem(pred, gt, metric)
    if valid is None:
        return jnp.mean(e)
    v = valid.astype(jnp.float32)
    elem_ratio = e.size / v.size
    return (e * v).sum() / (v.sum() * elem_ratio + 1e-12)


if __name__ == "__main__":
    key = jax.random.PRNGKey(0)
    k1, k2, k3, k4, k5, k6, k7 = jax.random.split(key, 7)

    B, C, H, W = 2, 4, 16, 16
    pred = jax.random.normal(k1, (B, C, H, W), dtype=jnp.float32)
    gt = jax.random.normal(k2, (B, C, H, W), dtype=jnp.float32)
    valid = jax.random.uniform(k3, (B, C, H, W)) > 0.3

    cases = []
    # 1) default l1, no mask
    cases.append((pixel_wise_error(pred, gt), _reference(pred, gt)))
    # 2) l1 with valid mask and boundary_ignore=2
    cases.append((pixel_wise_error(pred, gt, valid, metric='l1', boundary_ignore=2),
                  _reference(pred, gt, valid, metric='l1', boundary_ignore=2)))
    # 3) charbonnier, no mask
    cases.append((pixel_wise_error(pred, gt, metric='charbonnier'),
                  _reference(pred, gt, metric='charbonnier')))
    # 4) l2 with valid mask
    cases.append((pixel_wise_error(pred, gt, valid, metric='l2'),
                  _reference(pred, gt, valid, metric='l2')))
    # 5) single-channel bool mask (broadcast + elem_ratio semantics)
    valid_1c = jax.random.uniform(k4, (B, 1, H, W)) > 0.4
    cases.append((pixel_wise_error(pred, gt, valid_1c, metric='l1'),
                  _reference(pred, gt, valid_1c, metric='l1')))
    # 6) float-valued mask (multiply semantics)
    valid_f = jax.random.uniform(k4, (B, C, H, W), dtype=jnp.float32)
    cases.append((pixel_wise_error(pred, gt, valid_f, metric='l2'),
                  _reference(pred, gt, valid_f, metric='l2')))
    # 7/8) odd spatial size -> ragged last block + <128-element wrapper tail
    H2, W2 = 15, 15
    pred2 = jax.random.normal(k5, (B, C, H2, W2), dtype=jnp.float32)
    gt2 = jax.random.normal(k6, (B, C, H2, W2), dtype=jnp.float32)
    valid2 = jax.random.uniform(k7, (B, C, H2, W2)) > 0.5
    cases.append((pixel_wise_error(pred2, gt2, metric='charbonnier'),
                  _reference(pred2, gt2, metric='charbonnier')))
    cases.append((pixel_wise_error(pred2, gt2, valid2, metric='l1'),
                  _reference(pred2, gt2, valid2, metric='l1')))
    # 9) multi-chunk in-kernel loop (3x128-row chunks) with a ragged block
    pred3 = jax.random.normal(k5, (3, 4, 56, 64), dtype=jnp.float32)
    gt3 = jax.random.normal(k6, (3, 4, 56, 64), dtype=jnp.float32)
    valid3 = jax.random.uniform(k7, (3, 4, 56, 64)) > 0.5
    cases.append((pixel_wise_error(pred3, gt3, metric='l1'),
                  _reference(pred3, gt3, metric='l1')))
    # 10) force a multi-block grid (small block cap) to exercise the resident
    #     accumulator across the reduction axis and both pl.when paths.
    _saved_max = _MAX_BLOCK_ROWS
    globals()['_MAX_BLOCK_ROWS'] = 64
    try:
        cases.append((pixel_wise_error(pred3, gt3, valid3, metric='l1'),
                      _reference(pred3, gt3, valid3, metric='l1')))
        cases.append((pixel_wise_error(pred3, gt3, metric='charbonnier'),
                      _reference(pred3, gt3, metric='charbonnier')))
    finally:
        globals()['_MAX_BLOCK_ROWS'] = _saved_max

    outs = jax.block_until_ready([o for o, _ in cases])
    refs = [r for _, r in cases]
    for idx, (got, want) in enumerate(zip(outs, refs)):
        assert jnp.allclose(got, want, rtol=1e-5, atol=1e-6), (idx, got, want)

    print("KERNEL_OK")
</pallas_src>

<mosaic_0001>
module attributes {stable_mosaic.version = 11 : i64} {
  func.func @_pixel_err_kernel(%arg0: i32, %arg1: i32, %arg2: memref<16x128xf32, #tpu.memory_space<vmem>>, %arg3: memref<16x128xf32, #tpu.memory_space<vmem>>, %arg4: memref<1x8x128xf32, #tpu.memory_space<vmem>>) attributes {dimension_semantics = [#tpu.dimension_semantics<arbitrary>, #tpu.dimension_semantics<arbitrary>], iteration_bounds = array<i64: 1, 1>, scalar_prefetch = 0 : i64, scratch_operands = 0 : i64, tpu.core_type = #tpu.core_type<tc>, window_params = [{transform_indices = @transform_0, window_bounds = array<i64: 16, 128>}, {transform_indices = @transform_1, window_bounds = array<i64: 16, 128>}, {transform_indices = @transform_2, window_bounds = array<i64: 1, 8, 128>}]} {
    %c0_i32 = arith.constant 0 : i32
    %0 = arith.cmpi eq, %arg1, %c0_i32 : i32
    %1 = arith.extui %0 : i1 to i32
    %c0_i32_0 = arith.constant 0 : i32
    %2 = arith.cmpi ne, %1, %c0_i32_0 : i32
    scf.if %2 {
      %cst_11 = arith.constant 0.000000e+00 : f32
      %17 = vector.broadcast %cst_11 : f32 to vector<8x128xf32>
      %c0_12 = arith.constant 0 : index
      %c0_13 = arith.constant 0 : index
      %c0_14 = arith.constant 0 : index
      %18 = vector.load %arg4[%c0_12, %c0_13, %c0_14] : memref<1x8x128xf32, #tpu.memory_space<vmem>>, vector<1x8x128xf32>
      %19 = vector.shape_cast %18 : vector<1x8x128xf32> to vector<8x128xf32>
      %20 = vector.shape_cast %17 : vector<8x128xf32> to vector<1x8x128xf32>
      tpu.vector_store %arg4[%c0_12, %c0_13, %c0_14], %20 {strides = array<i32>} : memref<1x8x128xf32, #tpu.memory_space<vmem>>, vector<1x8x128xf32>,
    } else {
    }
    %cst = arith.constant 0.000000e+00 : f32
    %3 = vector.broadcast %cst : f32 to vector<8x128xf32>
    %c0 = arith.constant 0 : index
    %c0_1 = arith.constant 0 : index
    %4 = vector.load %arg2[%c0, %c0_1] : memref<16x128xf32, #tpu.memory_space<vmem>>, vector<16x128xf32>
    %c0_2 = arith.constant 0 : index
    %c0_3 = arith.constant 0 : index
    %5 = vector.load %arg3[%c0_2, %c0_3] : memref<16x128xf32, #tpu.memory_space<vmem>>, vector<16x128xf32>
    %6 = arith.subf %4, %5 : vector<16x128xf32>
    %7 = math.absf %6 : vector<16x128xf32>
    %8 = vector.shape_cast %7 : vector<16x128xf32> to vector<2x8x128xf32>
    %cst_4 = arith.constant dense<0.000000e+00> : vector<8x128xf32>
    %9 = vector.multi_reduction <add>, %8, %cst_4 [0] : vector<2x8x128xf32> to vector<8x128xf32>
    %10 = arith.addf %3, %9 : vector<8x128xf32>
    %c0_5 = arith.constant 0 : index
    %c0_6 = arith.constant 0 : index
    %c0_7 = arith.constant 0 : index
    %11 = vector.load %arg4[%c0_5, %c0_6, %c0_7] : memref<1x8x128xf32, #tpu.memory_space<vmem>>, vector<1x8x128xf32>
    %12 = vector.shape_cast %11 : vector<1x8x128xf32> to vector<8x128xf32>
    %13 = arith.addf %12, %10 : vector<8x128xf32>
    %c0_8 = arith.constant 0 : index
    %c0_9 = arith.constant 0 : index
    %c0_10 = arith.constant 0 : index
    %14 = vector.load %arg4[%c0_8, %c0_9, %c0_10] : memref<1x8x128xf32, #tpu.memory_space<vmem>>, vector<1x8x128xf32>
    %15 = vector.shape_cast %14 : vector<1x8x128xf32> to vector<8x128xf32>
    %16 = vector.shape_cast %13 : vector<8x128xf32> to vector<1x8x128xf32>
    tpu.vector_store %arg4[%c0_8, %c0_9, %c0_10], %16 {strides = array<i32>} : memref<1x8x128xf32, #tpu.memory_space<vmem>>, vector<1x8x128xf32>,
    return
  }
  func.func @transform_0(%arg0: i32, %arg1: i32) -> (i32, i32) {
    %c1_i32 = arith.constant 1 : i32
    %0 = arith.muli %arg0, %c1_i32 : i32
    %1 = arith.addi %0, %arg1 : i32
    %c0_i32 = arith.constant 0 : i32
    %2 = arith.minsi %1, %c0_i32 : i32
    %c0_i32_0 = arith.constant 0 : i32
    %c0_i32_1 = arith.constant 0 : i32
    return %2, %c0_i32_0 : i32, i32
  }
  func.func @transform_1(%arg0: i32, %arg1: i32) -> (i32, i32) {
    %c1_i32 = arith.constant 1 : i32
    %0 = arith.muli %arg0, %c1_i32 : i32
    %1 = arith.addi %0, %arg1 : i32
    %c0_i32 = arith.constant 0 : i32
    %2 = arith.minsi %1, %c0_i32 : i32
    %c0_i32_0 = arith.constant 0 : i32
    %c0_i32_1 = arith.constant 0 : i32
    return %2, %c0_i32_0 : i32, i32
  }
  func.func @transform_2(%arg0: i32, %arg1: i32) -> (i32, i32, i32) {
    %c0_i32 = arith.constant 0 : i32
    %c0_i32_0 = arith.constant 0 : i32
    %c0_i32_1 = arith.constant 0 : i32
    return %arg0, %c0_i32, %c0_i32_0 : i32, i32, i32
  }
}

</mosaic_0001>

<bundles_post_ra>
// kernel: tpu_custom_call.1
= control target key start
LH: loop header
LB: loop body
LE: loop exit
PB: predicated region body
PF: predicated region fallthrough
CT: control target
= control target key end

     0   :  { %7 = vsyncpa [#allocation3], 0  ;;  %s232_s0 = inlined_call_operand.hbm [shape: f32[16,128], index: 0, kind: input, shape index: {}]   ;;  %s233_s1 = inlined_call_operand.hbm [shape: f32[16,128], index: 1, kind: input, shape index: {}]   ;;  %s234_s2 = inlined_call_operand.hbm [shape: f32[1,8,128], index: 2, kind: output, shape index: {}]  }
   0x1   :  { %8 = vsyncpa [#allocation6], 0 }
   0x2   :  { %9 = vsyncpa [#allocation4], 0  ;;  %s176_s9 = smov [#allocation2]   ;;  %s104_s13 = scalar_lea.hbm %s232_s0, 256 }
   0x3   :  { %s21_s10 = sshll.u32 %s176_s9, 4  ;;  %p105_p0 = scmp.ne.s32.totalorder %s232_s0, %s104_s13  ;;  %s22_s10 = int_to_ptr.vmem [resolvable:$true] %s21_s10 }
   0x4   :  { %p108_p1 = scmp.lt.u32.totalorder %s104_s13, %s232_s0 }
   0x6   :  { %p110_p2 = pnand %p108_p1, %p105_p0 }
   0x8   :  { %113 = shalt.err (!%p110_p2)
}
   0x9   :  { %s114_s18 = scalar_lea.vmem %s22_s10, 256  ;;  %p119_p4 = scmp.lt.s32.totalorder %s22_s10, %s22_s10 }
   0xa   :  { %p115_p3 = scmp.ne.s32.totalorder %s22_s10, %s114_s18  ;;  %p120_p5 = scmp.lt.s32.totalorder %s114_s18, %s114_s18 }
   0xc   :  { %p121_p6 = por %p120_p5, %p119_p4 }
   0xe   :  { %p122_p7 = pnand %p121_p6, %p115_p3 }
  0x10   :  { %125 = shalt.err (!%p122_p7)
}
  0x11   :  { %s177_s19 = smov 128   ;;  %s178_s20 = smov 8  }
  0x12   :  { %27 = dma.hbm_to_vmem [thread:$0]  %s232_s0, 256, %s22_s10, [#allocation3], %s177_s19, %s177_s19, %s178_s20  }
  0x13   :  { %s179_s23 = smov [#allocation5]   ;;  %s126_s27 = scalar_lea.hbm %s233_s1, 256 }
  0x14   :  { %s39_s24 = sshll.u32 %s179_s23, 4  ;;  %p127_p8 = scmp.ne.s32.totalorder %s233_s1, %s126_s27  ;;  %s40_s24 = int_to_ptr.vmem [resolvable:$true] %s39_s24 }
  0x15   :  { %p130_p9 = scmp.lt.u32.totalorder %s126_s27, %s233_s1 }
  0x17   :  { %p132_p10 = pnand %p130_p9, %p127_p8 }
  0x19   :  { %135 = shalt.err (!%p132_p10)
}
  0x1a   :  { %s136_s4 = scalar_lea.vmem %s40_s24, 256  ;;  %p141_p12 = scmp.lt.s32.totalorder %s40_s24, %s40_s24 }
  0x1b   :  { %p137_p11 = scmp.ne.s32.totalorder %s40_s24, %s136_s4  ;;  %p142_p13 = scmp.lt.s32.totalorder %s136_s4, %s136_s4 }
  0x1d   :  { %p143_p0 = por %p142_p13, %p141_p12 }
  0x1f   :  { %p144_p1 = pnand %p143_p0, %p137_p11 }
  0x21   :  { %147 = shalt.err (!%p144_p1)
}
  0x22   :  { %45 = dma.hbm_to_vmem [thread:$0]  %s233_s1, 256, %s40_s24, [#allocation6], %s177_s19, %s177_s19, %s178_s20  }
  0x23   :  { %170 = dma.done.wait [#allocation3], 256  }
  0x24   :  { %171 = vsyncadd [#allocation3], 4294967040 }
  0x25   :  { %172 = dma.done.wait [#allocation6], 256  }
  0x26   :  { %173 = vsyncadd [#allocation6], 4294967040  ;;  %v65_v0 = vld [vmem:[#allocation2] sm:$0xff]  ;;  %v66_v1 = vld [vmem:[#allocation2 + $0x8] sm:$0xff]  ;;  %s180_s6 = smov [#allocation7]  }
  0x27   :  { %v67_v2 = vld [vmem:[#allocation5] sm:$0xff]  ;;  %v68_v3 = vld [vmem:[#allocation5 + $0x8] sm:$0xff]  ;;  %s84_s7 = sshll.u32 %s180_s6, 4  ;;  %s85_s7 = int_to_ptr.vmem [resolvable:$true] %s84_s7 }
  0x28   :  { %v69_v4 = vsub.f32 %v65_v0, %v67_v2  ;;  %v70_v5 = vsub.f32 %v66_v1, %v68_v3  ;;  %s148_s8 = scalar_lea.vmem %s85_s7, 128  ;;  %p153_p3 = scmp.lt.s32.totalorder %s85_s7, %s85_s7 }
  0x29   :  { %p149_p2 = scmp.ne.s32.totalorder %s85_s7, %s148_s8  ;;  %p154_p4 = scmp.lt.s32.totalorder %s148_s8, %s148_s8 }
  0x2a   :  { %v71_v6 = vand.u32 2147483647, %v69_v4  ;;  %v72_v7 = vand.u32 2147483647, %v70_v5 }
  0x2b   :  { %p155_p5 = por %p154_p4, %p153_p3 }
  0x2c   :  { %v73_v8 = vadd.f32 %v72_v7, %v71_v6 }
  0x2d   :  { %p156_p6 = pnand %p155_p5, %p149_p2 }
  0x2e   :  { %77 = vst [vmem:[#allocation7] sm:$0xff] %v73_v8 }
  0x2f   :  { %159 = shalt.err (!%p156_p6)
}
  0x30   :  { %s160_s10 = scalar_lea.hbm %s234_s2, 128 }
  0x31   :  { %p161_p7 = scmp.ne.s32.totalorder %s234_s2, %s160_s10  ;;  %p164_p8 = scmp.lt.u32.totalorder %s160_s10, %s234_s2 }
  0x33   :  { %p166_p9 = pnand %p164_p8, %p161_p7 }
  0x35   :  { %169 = shalt.err (!%p166_p9)
}
  0x36   :  { %87 = dma.vmem_to_hbm [thread:$0]  %s85_s7, 128, %s234_s2, [#allocation4]  }
  0x37   :  { %174 = dma.done.wait [#allocation4], 128  }
  0x38   :  { %175 = vsyncadd [#allocation4], 4294967168 }
  0x39   :  { %91 = vsyncpa [#allocation3], 1 }
  0x3a   :  { %92 = vsyncpa [#allocation6], 1 }
  0x3b   :  { %93 = vsyncpa [#allocation4], 1 }

</bundles_post_ra>
